<compile_context>
chip_gen: v7x
topology: tpu7x:2x2x1
jax: 0.10.0
libtpu: 0.0.40
codegen_flags: <defaults>
</compile_context>

<pallas_src>
import functools

import jax
import jax.numpy as jnp
from jax.experimental import pallas as pl
from jax.experimental.pallas import tpu as pltpu
import numpy as np


def _mlp_kernel(x_ref, w_ref, b_ref, o_ref, *, n_layers):
    # Batch tile arrives in bf16; all layer math stays on-chip.
    h = x_ref[...]

    # Static unroll over layers (n_layers is a small Python int; all weights
    # are already resident in VMEM).
    for l in range(n_layers):
        # bf16 x bf16 MXU matmul with f32 accumulation: y = h @ W_l^T + b_l
        y = (
            jnp.dot(
                h.astype(jnp.bfloat16),
                w_ref[l],
                preferred_element_type=jnp.float32,
            )
            + b_ref[l]  # (1, W) broadcasts over the batch tile
        )
        # Swish in f32 (keep VPU/EUP math f32 for v5e compatibility).
        h = jax.nn.sigmoid(y) * y

    o_ref[...] = h.astype(o_ref.dtype)


def prepare_params(weights, biases):
    """One-time parameter packing — do NOT call per forward pass.

    weights: list of (W, W) PyTorch-convention (out, in) f32 matrices.
    biases:  list of (W,) f32 vectors.
    Returns (w_stacked, b_stacked) where
      w_stacked: (L, W, W) bf16, already transposed so the kernel does h @ w[l],
      b_stacked: (L, 1, W) f32.
    """
    w_stacked = jnp.stack([w.T for w in weights], axis=0).astype(jnp.bfloat16)
    b_stacked = jnp.stack(biases, axis=0)[:, None, :].astype(jnp.float32)
    return w_stacked, b_stacked


def _round_up(a, m):
    return ((a + m - 1) // m) * m


def _resident_spec(shape):
    """Full-block, grid-constant spec; single-buffered since its index_map never changes."""
    index_map = lambda i: (0,) * len(shape)
    try:
        return pl.BlockSpec(shape, index_map, pipeline_mode=pl.Buffered(1))
    except TypeError:  # older Pallas without pipeline_mode kwarg
        return pl.BlockSpec(shape, index_map)


def mlp_ndp_pallas(x, w_stacked, b_stacked, *, block_b=2048, out_dtype=None):
    """x: (B, W) float; w_stacked: (L, W, W) bf16 (pre-transposed); b_stacked: (L, 1, W) f32."""
    assert block_b % 8 == 0, "block_b must be a multiple of 8 for (8,128) tiling"
    B, W = x.shape
    L = int(w_stacked.shape[0])
    out_dtype = x.dtype if out_dtype is None else out_dtype

    # Feed x in bf16: the first matmul casts the LHS to bf16 anyway, so this is
    # numerically identical while halving input HBM traffic on a mem-bound kernel.
    x_in = x.astype(jnp.bfloat16)

    # Batch tiling:
    #  * single block at toy sizes (full-dim exemption from the (8,128) rule),
    #  * otherwise an even number of >=2 tiles (both v7x TensorCores get work),
    #    with bm a multiple of 8.
    if B <= block_b:
        bm = B
    else:
        n_tiles = _round_up(max(2, pl.cdiv(B, block_b)), 2)
        bm = _round_up(pl.cdiv(B, n_tiles), 8)
    grid = (pl.cdiv(B, bm),)

    # Scoped-VMEM budget: x/out tiles are double-buffered by the pipeline,
    # weights/biases are resident (single-buffered).  Only raise the limit when
    # we'd exceed the conservative default (v5e: 16 MiB scoped default).
    w_bytes = int(np.prod(w_stacked.shape)) * w_stacked.dtype.itemsize
    b_bytes = int(np.prod(b_stacked.shape)) * b_stacked.dtype.itemsize
    est_bytes = (
        2 * bm * W * x_in.dtype.itemsize
        + 2 * bm * W * jnp.dtype(out_dtype).itemsize
        + w_bytes
        + b_bytes
    )
    vmem_limit = None
    if est_bytes > (14 << 20):
        vmem_limit = min(est_bytes + (8 << 20), 100 << 20)

    kernel = functools.partial(_mlp_kernel, n_layers=L)

    return pl.pallas_call(
        kernel,
        out_shape=jax.ShapeDtypeStruct((B, W), out_dtype),
        grid_spec=pltpu.PrefetchScalarGridSpec(
            num_scalar_prefetch=0,
            grid=grid,
            in_specs=[
                pl.BlockSpec((bm, W), lambda i: (i, 0)),  # batch tile of x (bf16)
                _resident_spec((L, W, W)),                # all weights, resident
                _resident_spec((L, 1, W)),                # all biases, resident
            ],
            out_specs=pl.BlockSpec((bm, W), lambda i: (i, 0)),
        ),
        compiler_params=pltpu.CompilerParams(
            dimension_semantics=("parallel",),
            vmem_limit_bytes=vmem_limit,
        ),
    )(x_in, w_stacked, b_stacked)


def mlp_ndp_reference(x, weights, biases):
    h = x
    for w, b in zip(weights, biases):
        y = h @ w.T + b
        h = jax.nn.sigmoid(y) * y
    return h


if __name__ == "__main__":
    depth = 4          # -> depth - 1 = 3 linear layers, as in MLP_ndp.__init__
    width = 128
    batch = 8          # NOTE: at this toy size the call is launch/DMA-latency bound.

    key = jax.random.PRNGKey(0)
    kx, *kws = jax.random.split(key, 1 + 2 * (depth - 1))

    x = jax.random.normal(kx, (batch, width), dtype=jnp.float32)

    # Deterministic parameter init (PyTorch Linear-style uniform(-1/sqrt(W), 1/sqrt(W))).
    bound = 1.0 / np.sqrt(width)
    weights, biases = [], []
    for i in range(depth - 1):
        w = jax.random.uniform(kws[2 * i], (width, width), jnp.float32, -bound, bound)
        b = jax.random.uniform(kws[2 * i + 1], (width,), jnp.float32, -bound, bound)
        weights.append(w)
        biases.append(b)

    # One-time packing (stack + transpose + bf16 cast) — hoisted out of the call path.
    w_stacked, b_stacked = prepare_params(weights, biases)

    out = mlp_ndp_pallas(x, w_stacked, b_stacked)
    out = jax.block_until_ready(out)

    ref = mlp_ndp_reference(x, weights, biases)
    # Widened tolerance vs pure-f32: weights and the layer inputs are fed to the
    # MXU in bf16 (f32 accumulation) — an intentional precision/bandwidth trade.
    np.testing.assert_allclose(np.asarray(out), np.asarray(ref), rtol=2e-2, atol=2e-2)

    print("KERNEL_OK")
</pallas_src>

<mosaic_0001>
module attributes {stable_mosaic.version = 11 : i64} {
  func.func @_mlp_kernel(%arg0: i32, %arg1: memref<8x128xbf16, #tpu.memory_space<vmem>>, %arg2: memref<3x128x128xbf16, #tpu.memory_space<vmem>>, %arg3: memref<3x1x128xf32, #tpu.memory_space<vmem>>, %arg4: memref<8x128xf32, #tpu.memory_space<vmem>>) attributes {dimension_semantics = [#tpu.dimension_semantics<parallel>], iteration_bounds = array<i64: 1>, scalar_prefetch = 0 : i64, scratch_operands = 0 : i64, tpu.core_type = #tpu.core_type<tc>, window_params = [{transform_indices = @transform_0, window_bounds = array<i64: 8, 128>}, {pipeline_mode = #tpu.pipeline_mode<synchronous>, transform_indices = @transform_1, window_bounds = array<i64: 3, 128, 128>}, {pipeline_mode = #tpu.pipeline_mode<synchronous>, transform_indices = @transform_2, window_bounds = array<i64: 3, 1, 128>}, {transform_indices = @transform_3, window_bounds = array<i64: 8, 128>}]} {
    %c0 = arith.constant 0 : index
    %c0_0 = arith.constant 0 : index
    %0 = vector.load %arg1[%c0, %c0_0] : memref<8x128xbf16, #tpu.memory_space<vmem>>, vector<8x128xbf16>
    %c0_1 = arith.constant 0 : index
    %c0_2 = arith.constant 0 : index
    %c0_3 = arith.constant 0 : index
    %1 = vector.load %arg2[%c0_1, %c0_2, %c0_3] : memref<3x128x128xbf16, #tpu.memory_space<vmem>>, vector<1x128x128xbf16>
    %2 = vector.shape_cast %1 : vector<1x128x128xbf16> to vector<128x128xbf16>
    %cst = arith.constant dense<0.000000e+00> : vector<8x128xf32>
    %3 = tpu.matmul %0, %2, %cst {dimension_numbers = #tpu.dot_dimension_numbers<[1], [0], [0], [1], [0, 0, 1, 1], [], []>} : vector<8x128xbf16>, vector<128x128xbf16>, vector<8x128xf32> -> vector<8x128xf32>
    %c0_4 = arith.constant 0 : index
    %c0_5 = arith.constant 0 : index
    %c0_6 = arith.constant 0 : index
    %4 = vector.load %arg3[%c0_4, %c0_5, %c0_6] : memref<3x1x128xf32, #tpu.memory_space<vmem>>, vector<1x1x128xf32>
    %5 = vector.shape_cast %4 : vector<1x1x128xf32> to vector<1x128xf32>
    %6 = vector.broadcast %5 : vector<1x128xf32> to vector<8x128xf32>
    %7 = arith.addf %3, %6 : vector<8x128xf32>
    %8 = arith.negf %7 : vector<8x128xf32>
    %9 = math.exp %8 : vector<8x128xf32>
    %cst_7 = arith.constant 1.000000e+00 : f32
    %10 = vector.broadcast %cst_7 : f32 to vector<8x128xf32>
    %11 = arith.addf %10, %9 : vector<8x128xf32>
    %12 = arith.divf %10, %11 : vector<8x128xf32>
    %13 = arith.mulf %12, %7 : vector<8x128xf32>
    %14 = arith.truncf %13 : vector<8x128xf32> to vector<8x128xbf16>
    %c1 = arith.constant 1 : index
    %c0_8 = arith.constant 0 : index
    %c0_9 = arith.constant 0 : index
    %15 = vector.load %arg2[%c1, %c0_8, %c0_9] : memref<3x128x128xbf16, #tpu.memory_space<vmem>>, vector<1x128x128xbf16>
    %16 = vector.shape_cast %15 : vector<1x128x128xbf16> to vector<128x128xbf16>
    %cst_10 = arith.constant dense<0.000000e+00> : vector<8x128xf32>
    %17 = tpu.matmul %14, %16, %cst_10 {dimension_numbers = #tpu.dot_dimension_numbers<[1], [0], [0], [1], [0, 0, 1, 1], [], []>} : vector<8x128xbf16>, vector<128x128xbf16>, vector<8x128xf32> -> vector<8x128xf32>
    %c1_11 = arith.constant 1 : index
    %c0_12 = arith.constant 0 : index
    %c0_13 = arith.constant 0 : index
    %18 = vector.load %arg3[%c1_11, %c0_12, %c0_13] : memref<3x1x128xf32, #tpu.memory_space<vmem>>, vector<1x1x128xf32>
    %19 = vector.shape_cast %18 : vector<1x1x128xf32> to vector<1x128xf32>
    %20 = vector.broadcast %19 : vector<1x128xf32> to vector<8x128xf32>
    %21 = arith.addf %17, %20 : vector<8x128xf32>
    %22 = arith.negf %21 : vector<8x128xf32>
    %23 = math.exp %22 : vector<8x128xf32>
    %cst_14 = arith.constant 1.000000e+00 : f32
    %24 = vector.broadcast %cst_14 : f32 to vector<8x128xf32>
    %25 = arith.addf %24, %23 : vector<8x128xf32>
    %26 = arith.divf %24, %25 : vector<8x128xf32>
    %27 = arith.mulf %26, %21 : vector<8x128xf32>
    %28 = arith.truncf %27 : vector<8x128xf32> to vector<8x128xbf16>
    %c2 = arith.constant 2 : index
    %c0_15 = arith.constant 0 : index
    %c0_16 = arith.constant 0 : index
    %29 = vector.load %arg2[%c2, %c0_15, %c0_16] : memref<3x128x128xbf16, #tpu.memory_space<vmem>>, vector<1x128x128xbf16>
    %30 = vector.shape_cast %29 : vector<1x128x128xbf16> to vector<128x128xbf16>
    %cst_17 = arith.constant dense<0.000000e+00> : vector<8x128xf32>
    %31 = tpu.matmul %28, %30, %cst_17 {dimension_numbers = #tpu.dot_dimension_numbers<[1], [0], [0], [1], [0, 0, 1, 1], [], []>} : vector<8x128xbf16>, vector<128x128xbf16>, vector<8x128xf32> -> vector<8x128xf32>
    %c2_18 = arith.constant 2 : index
    %c0_19 = arith.constant 0 : index
    %c0_20 = arith.constant 0 : index
    %32 = vector.load %arg3[%c2_18, %c0_19, %c0_20] : memref<3x1x128xf32, #tpu.memory_space<vmem>>, vector<1x1x128xf32>
    %33 = vector.shape_cast %32 : vector<1x1x128xf32> to vector<1x128xf32>
    %34 = vector.broadcast %33 : vector<1x128xf32> to vector<8x128xf32>
    %35 = arith.addf %31, %34 : vector<8x128xf32>
    %36 = arith.negf %35 : vector<8x128xf32>
    %37 = math.exp %36 : vector<8x128xf32>
    %cst_21 = arith.constant 1.000000e+00 : f32
    %38 = vector.broadcast %cst_21 : f32 to vector<8x128xf32>
    %39 = arith.addf %38, %37 : vector<8x128xf32>
    %40 = arith.divf %38, %39 : vector<8x128xf32>
    %41 = arith.mulf %40, %35 : vector<8x128xf32>
    %c0_22 = arith.constant 0 : index
    %c0_23 = arith.constant 0 : index
    %42 = vector.load %arg4[%c0_22, %c0_23] : memref<8x128xf32, #tpu.memory_space<vmem>>, vector<8x128xf32>
    tpu.vector_store %arg4[%c0_22, %c0_23], %41 {strides = array<i32>} : memref<8x128xf32, #tpu.memory_space<vmem>>, vector<8x128xf32>,
    return
  }
  func.func @transform_0(%arg0: i32) -> (i32, i32) {
    %c0_i32 = arith.constant 0 : i32
    %c0_i32_0 = arith.constant 0 : i32
    return %arg0, %c0_i32 : i32, i32
  }
  func.func @transform_1(%arg0: i32) -> (i32, i32, i32) {
    %c0_i32 = arith.constant 0 : i32
    %c0_i32_0 = arith.constant 0 : i32
    %c0_i32_1 = arith.constant 0 : i32
    %c0_i32_2 = arith.constant 0 : i32
    return %c0_i32, %c0_i32_0, %c0_i32_1 : i32, i32, i32
  }
  func.func @transform_2(%arg0: i32) -> (i32, i32, i32) {
    %c0_i32 = arith.constant 0 : i32
    %c0_i32_0 = arith.constant 0 : i32
    %c0_i32_1 = arith.constant 0 : i32
    %c0_i32_2 = arith.constant 0 : i32
    return %c0_i32, %c0_i32_0, %c0_i32_1 : i32, i32, i32
  }
  func.func @transform_3(%arg0: i32) -> (i32, i32) {
    %c0_i32 = arith.constant 0 : i32
    %c0_i32_0 = arith.constant 0 : i32
    return %arg0, %c0_i32 : i32, i32
  }
}

</mosaic_0001>

<bundles_post_ra>
// kernel: tpu_custom_call.1
= control target key start
LH: loop header
LB: loop body
LE: loop exit
PB: predicated region body
PF: predicated region fallthrough
CT: control target
= control target key end

     0   :  { %8 = vsyncpa [#allocation3], 0  ;;  %s763_s0 = inlined_call_operand.hbm [shape: bf16[8,128], index: 0, kind: input, shape index: {}]   ;;  %s764_s1 = inlined_call_operand.hbm [shape: bf16[3,128,128], index: 1, kind: input, shape index: {}]   ;;  %s765_s2 = inlined_call_operand.vmem [shape: f32[3,1,128], index: 2, kind: input, shape index: {}]   ;;  %s766_s3 = inlined_call_operand.hbm [shape: f32[8,128], index: 3, kind: output, shape index: {}]  }
   0x1   :  { %9 = vsyncpa [#allocation6], 0 }
   0x2   :  { %10 = vsyncpa [#allocation4], 0  ;;  %s654_s12 = smov [#allocation2]   ;;  %s655_s14 = smov [#allocation5]  }
   0x3   :  { %s17_s13 = sshll.u32 %s654_s12, 4  ;;  %s26_s15 = sshll.u32 %s655_s14, 4  ;;  %s18_s13 = int_to_ptr.vmem [resolvable:$true] %s17_s13  ;;  %s681_s15 = int_to_ptr.vmem [resolvable:$true] %s26_s15 }
   0x4   :  { %s582_s18 = scalar_lea.hbm %s763_s0, 64 }
   0x5   :  { %p583_p0 = scmp.ne.s32.totalorder %s763_s0, %s582_s18  ;;  %p586_p1 = scmp.lt.u32.totalorder %s582_s18, %s763_s0 }
   0x7   :  { %p588_p2 = pnand %p586_p1, %p583_p0 }
   0x9   :  { %591 = shalt.err (!%p588_p2)
}
   0xa   :  { %s592_s23 = scalar_lea.vmem %s18_s13, 64  ;;  %p597_p4 = scmp.lt.s32.totalorder %s18_s13, %s18_s13 }
   0xb   :  { %p593_p3 = scmp.ne.s32.totalorder %s18_s13, %s592_s23  ;;  %p598_p5 = scmp.lt.s32.totalorder %s592_s23, %s592_s23 }
   0xd   :  { %p599_p6 = por %p598_p5, %p597_p4 }
   0xf   :  { %p600_p7 = pnand %p599_p6, %p593_p3 }
  0x11   :  { %603 = shalt.err (!%p600_p7)
}
  0x12   :  { %20 = dma.hbm_to_vmem [thread:$0]  %s763_s0, 64, %s18_s13, [#allocation3]  }
  0x13   :  { %s604_s28 = scalar_lea.hbm %s764_s1, 3072 }
  0x14   :  { %p605_p8 = scmp.ne.s32.totalorder %s764_s1, %s604_s28  ;;  %p608_p9 = scmp.lt.u32.totalorder %s604_s28, %s764_s1 }
  0x16   :  { %p610_p10 = pnand %p608_p9, %p605_p8 }
  0x18   :  { %613 = shalt.err (!%p610_p10)
}
  0x19   :  { %s614_s6 = scalar_lea.vmem %s681_s15, 3072  ;;  %p619_p12 = scmp.lt.s32.totalorder %s681_s15, %s681_s15 }
  0x1a   :  { %p615_p11 = scmp.ne.s32.totalorder %s681_s15, %s614_s6  ;;  %p620_p13 = scmp.lt.s32.totalorder %s614_s6, %s614_s6 }
  0x1c   :  { %p621_p0 = por %p620_p13, %p619_p12 }
  0x1e   :  { %p622_p1 = pnand %p621_p0, %p615_p11 }
  0x20   :  { %625 = shalt.err (!%p622_p1)
}
  0x21   :  { %s656_s0 = smov 64   ;;  %s657_s7 = smov 4  }
  0x22   :  { %32 = dma.hbm_to_vmem [thread:$0]  %s764_s1, 3072, %s681_s15, [#allocation6], %s656_s0, %s656_s0, %s657_s7  }
  0x23   :  { %648 = dma.done.wait [#allocation3], 64  }
  0x24   :  { %649 = vsyncadd [#allocation3], 4294967232 }
  0x25   :  { %650 = dma.done.wait [#allocation6], 3072  }
  0x26   :  { %651 = vsyncadd [#allocation6], 4294964224  ;;  %v658_v0 = vmov 0.0   ;;  %vm659_vm0 = vmmov 0   ;;  %v546_v1 = vld [vmem:[#allocation5] sm:$0xff]   ;;  %v547_v2 = vld [vmem:[#allocation5 + $0x8] sm:$0xff]  }
  0x27   :  { %479 = vmatprep.subr.bf16.mxu0 %v658_v0  ;;  %495 = vmatprep.mubr.msk.bf16.mxu0 %vm659_vm0, %v658_v0  ;;  %v548_v3 = vld [vmem:[#allocation5 + $0x10] sm:$0xff]   ;;  %v549_v4 = vld [vmem:[#allocation5 + $0x18] sm:$0xff]   ;;  %v550_v5 = vld [vmem:[#allocation5 + $0x20] sm:$0xff]   ;;  %s660_s15 = smov [#allocation7]  }
  0x28   :  { %499 = vmatprep.subr.bf16.mxu1 %v658_v0  ;;  %515 = vmatprep.mubr.msk.bf16.mxu1 %vm659_vm0, %v658_v0  ;;  %v551_v6 = vld [vmem:[#allocation5 + $0x28] sm:$0xff]   ;;  %v552_v7 = vld [vmem:[#allocation5 + $0x30] sm:$0xff]   ;;  %v553_v8 = vld [vmem:[#allocation5 + $0x38] sm:$0xff]   ;;  %s410_s16 = sshll.u32 %s660_s15, 4  ;;  %s411_s16 = int_to_ptr.vmem [resolvable:$true] %s410_s16 }
  0x29   :  { %480 = vmatpush3.bf16.msra.mxu0 %v546_v1  ;;  %v42_v9 = vld [vmem:[#allocation2] sm:$0xf]  ;;  %v554_v10 = vld [vmem:[#allocation5 + $0x40] sm:$0xff]   ;;  %v555_v11 = vld [vmem:[#allocation5 + $0x48] sm:$0xff]   ;;  %s626_s17 = scalar_lea.vmem %s411_s16, 128  ;;  %p631_p3 = scmp.lt.s32.totalorder %s411_s16, %s411_s16 }
  0x2a   :  { %481 = vmatprep.subr.bf16.mxu0 %v658_v0  ;;  %500 = vmatpush3.bf16.msra.mxu1 %v554_v10  ;;  %v556_v12 = vld [vmem:[#allocation5 + $0x50] sm:$0xff]   ;;  %v557_v13 = vld [vmem:[#allocation5 + $0x58] sm:$0xff]   ;;  %v558_v14 = vld [vmem:[#allocation5 + $0x60] sm:$0xff]   ;;  %p627_p2 = scmp.ne.s32.totalorder %s411_s16, %s626_s17  ;;  %p632_p4 = scmp.lt.s32.totalorder %s626_s17, %s626_s17 }
  0x2b   :  { %501 = vmatprep.subr.bf16.mxu1 %v658_v0  ;;  %v559_v15 = vld [vmem:[#allocation5 + $0x68] sm:$0xff]   ;;  %v560_v16 = vld [vmem:[#allocation5 + $0x70] sm:$0xff]   ;;  %v561_v17 = vld [vmem:[#allocation5 + $0x78] sm:$0xff]  }
  0x2c   :  { %v420_v18 = vld [vmem:[%s765_s2] ss:$0 sm:$0xff]  ;;  %v562_v30 = vld [vmem:[#allocation5 + $0x80] sm:$0xff]   ;;  %v563_v31 = vld [vmem:[#allocation5 + $0x88] sm:$0xff]   ;;  %p633_p5 = por %p632_p4, %p631_p3 }
  0x2d   :  { %482 = vmatpush3.bf16.msra.mxu0 %v547_v2  ;;  %v564_v32 = vld [vmem:[#allocation5 + $0x90] sm:$0xff]   ;;  %v565_v33 = vld [vmem:[#allocation5 + $0x98] sm:$0xff]   ;;  %v566_v34 = vld [vmem:[#allocation5 + $0xa0] sm:$0xff]  }
  0x2e   :  { %483 = vmatprep.subr.bf16.mxu0 %v658_v0  ;;  %502 = vmatpush3.bf16.msra.mxu1 %v555_v11  ;;  %v567_v35 = vld [vmem:[#allocation5 + $0xa8] sm:$0xff]   ;;  %v568_v36 = vld [vmem:[#allocation5 + $0xb0] sm:$0xff]   ;;  %v569_v37 = vld [vmem:[#allocation5 + $0xb8] sm:$0xff]   ;;  %p634_p6 = pnand %p633_p5, %p627_p2 }
  0x2f   :  { %503 = vmatprep.subr.bf16.mxu1 %v658_v0  ;;  %v431_v38 = vld [vmem:[%s765_s2 + $0x1] ss:$0 sm:$0xff]  ;;  %v442_v50 = vld [vmem:[%s765_s2 + $0x2] ss:$0 sm:$0xff] }
  0x31   :  { %484 = vmatpush3.bf16.msra.mxu0 %v548_v3 }
  0x32   :  { %485 = vmatprep.subr.bf16.mxu0 %v658_v0  ;;  %504 = vmatpush3.bf16.msra.mxu1 %v556_v12 }
  0x33   :  { %505 = vmatprep.subr.bf16.mxu1 %v658_v0 }
  0x35   :  { %486 = vmatpush3.bf16.msra.mxu0 %v549_v4 }
  0x36   :  { %487 = vmatprep.subr.bf16.mxu0 %v658_v0  ;;  %506 = vmatpush3.bf16.msra.mxu1 %v557_v13 }
  0x37   :  { %507 = vmatprep.subr.bf16.mxu1 %v658_v0 }
  0x39   :  { %488 = vmatpush3.bf16.msra.mxu0 %v550_v5 }
  0x3a   :  { %489 = vmatprep.subr.bf16.mxu0 %v658_v0  ;;  %508 = vmatpush3.bf16.msra.mxu1 %v558_v14 }
  0x3b   :  { %509 = vmatprep.subr.bf16.mxu1 %v658_v0 }
  0x3d   :  { %490 = vmatpush3.bf16.msra.mxu0 %v551_v6 }
  0x3e   :  { %491 = vmatprep.subr.bf16.mxu0 %v658_v0  ;;  %510 = vmatpush3.bf16.msra.mxu1 %v559_v15 }
  0x3f   :  { %511 = vmatprep.subr.bf16.mxu1 %v658_v0 }
  0x41   :  { %492 = vmatpush3.bf16.msra.mxu0 %v552_v7 }
  0x42   :  { %493 = vmatprep.subr.bf16.mxu0 %v658_v0  ;;  %512 = vmatpush3.bf16.msra.mxu1 %v560_v16 }
  0x43   :  { %513 = vmatprep.subr.bf16.mxu1 %v658_v0 }
  0x45   :  { %494 = vmatpush3.bf16.msra.mxu0 %v553_v8 }
  0x46   :  { %519 = vmatprep.subr.bf16.mxu0 %v658_v0  ;;  %514 = vmatpush3.bf16.msra.mxu1 %v561_v17 }
  0x48   :  { %496 = vmatmul.mubr.bf16.vlgmr.msra.gmra.mrb[0].mxu0 %v42_v9 }
  0x49   :  { %535 = vmatprep.mubr.msk.bf16.mxu0 %vm659_vm0, %v658_v0  ;;  %520 = vmatpush3.bf16.msra.mxu0 %v562_v30 }
  0x4a   :  { %521 = vmatprep.subr.bf16.mxu0 %v658_v0 }
  0x4d   :  { %522 = vmatpush3.bf16.msra.mxu0 %v563_v31 }
  0x4e   :  { %523 = vmatprep.subr.bf16.mxu0 %v658_v0 }
  0x51   :  { %524 = vmatpush3.bf16.msra.mxu0 %v564_v32 }
  0x52   :  { %525 = vmatprep.subr.bf16.mxu0 %v658_v0 }
  0x55   :  { %526 = vmatpush3.bf16.msra.mxu0 %v565_v33 }
  0x56   :  { %527 = vmatprep.subr.bf16.mxu0 %v658_v0 }
  0x59   :  { %528 = vmatpush3.bf16.msra.mxu0 %v566_v34 }
  0x5a   :  { %529 = vmatprep.subr.bf16.mxu0 %v658_v0 }
  0x5d   :  { %530 = vmatpush3.bf16.msra.mxu0 %v567_v35 }
  0x5e   :  { %531 = vmatprep.subr.bf16.mxu0 %v658_v0 }
  0x61   :  { %532 = vmatpush3.bf16.msra.mxu0 %v568_v36 }
  0x62   :  { %533 = vmatprep.subr.bf16.mxu0 %v658_v0 }
  0x65   :  { %534 = vmatpush3.bf16.msra.mxu0 %v569_v37 }
 0x11b   :  { %v148_v19 = vpop.f32.mrb[0].mxu0 }
 0x11c   :  { %v149_v20 = vadd.f32 %v420_v18, %v148_v19  ;;  %v497_v21 = vpop.f32.mrb[1].mxu0 }
 0x11d   :  { %v151_v22 = vpop.f32.mrb[2].mxu0 }
 0x11e   :  { %v429_v23 = vmul.f32 -1.442695, %v149_v20  ;;  %v498_v24 = vpop.f32.mrb[3].mxu0 }
 0x120   :  { %570 = vpow2.f32 %v429_v23 }
 0x12a   :  { %v571_v25 = vpop.eup %570 }
 0x12b   :  { %v157_v26 = vadd.f32 1.0, %v571_v25 }
 0x12d   :  { %572 = vrcp.f32 %v157_v26 }
 0x137   :  { %v573_v27 = vpop.eup %572 }
 0x138   :  { %v160_v28 = vmul.f32 %v573_v27, %v149_v20 }
 0x13a   :  { %v161_v29 = vpack.c.bf16 %v160_v28, %v160_v28 }
 0x13c   :  { %516 = vmatmul.mubr.bf16.vlgmr.msra.gmra.mrb[0].mxu1 %v161_v29 }
 0x20f   :  { %v269_v39 = vpop.f32.mrb[0].mxu1 }
 0x210   :  { %v270_v40 = vadd.f32 %v431_v38, %v269_v39  ;;  %v517_v41 = vpop.f32.mrb[1].mxu1 }
 0x211   :  { %v272_v42 = vpop.f32.mrb[2].mxu1 }
 0x212   :  { %v440_v43 = vmul.f32 -1.442695, %v270_v40  ;;  %v518_v44 = vpop.f32.mrb[3].mxu1 }
 0x214   :  { %574 = vpow2.f32 %v440_v43 }
 0x21e   :  { %v575_v45 = vpop.eup %574 }
 0x21f   :  { %v278_v46 = vadd.f32 1.0, %v575_v45 }
 0x221   :  { %576 = vrcp.f32 %v278_v46 }
 0x22b   :  { %v577_v47 = vpop.eup %576 }
 0x22c   :  { %v281_v48 = vmul.f32 %v577_v47, %v270_v40 }
 0x22e   :  { %v282_v49 = vpack.c.bf16 %v281_v48, %v281_v48 }
 0x230   :  { %536 = vmatmul.mubr.bf16.vlgmr.msra.gmra.mrb[4].mxu0 %v282_v49 }
 0x303   :  { %v390_v51 = vpop.f32.mrb[4].mxu0 }
 0x304   :  { %v391_v52 = vadd.f32 %v442_v50, %v390_v51  ;;  %v537_v53 = vpop.f32.mrb[5].mxu0 }
 0x305   :  { %v393_v54 = vpop.f32.mrb[6].mxu0 }
 0x306   :  { %v451_v55 = vmul.f32 -1.442695, %v391_v52  ;;  %v538_v56 = vpop.f32.mrb[7].mxu0 }
 0x308   :  { %578 = vpow2.f32 %v451_v55 }
 0x312   :  { %v579_v57 = vpop.eup %578 }
 0x313   :  { %v399_v58 = vadd.f32 1.0, %v579_v57 }
 0x315   :  { %580 = vrcp.f32 %v399_v58 }
 0x31f   :  { %v581_v59 = vpop.eup %580 }
 0x320   :  { %v402_v60 = vmul.f32 %v581_v59, %v391_v52 }
 0x322   :  { %403 = vst [vmem:[#allocation7] sm:$0xff] %v402_v60 }
 0x323   :  { %637 = shalt.err (!%p634_p6)
}
 0x324   :  { %s638_s19 = scalar_lea.hbm %s766_s3, 128 }
 0x325   :  { %p639_p7 = scmp.ne.s32.totalorder %s766_s3, %s638_s19  ;;  %p642_p8 = scmp.lt.u32.totalorder %s638_s19, %s766_s3 }
 0x327   :  { %p644_p9 = pnand %p642_p8, %p639_p7 }
 0x329   :  { %647 = shalt.err (!%p644_p9)
}
 0x32a   :  { %413 = dma.vmem_to_hbm [thread:$0]  %s411_s16, 128, %s766_s3, [#allocation4]  }
 0x32b   :  { %652 = dma.done.wait [#allocation4], 128  }
 0x32c   :  { %653 = vsyncadd [#allocation4], 4294967168 }
 0x32d   :  { %417 = vsyncpa [#allocation3], 1 }
 0x32e   :  { %418 = vsyncpa [#allocation6], 1 }
 0x32f   :  { %419 = vsyncpa [#allocation4], 1 }

</bundles_post_ra>
